<compile_context>
chip_gen: v7x
topology: tpu7x:2x2x1
jax: 0.10.0
libtpu: 0.0.40
codegen_flags: <defaults>
</compile_context>

<pallas_src>
import functools
import math

import jax
import jax.numpy as jnp
from jax.experimental import pallas as pl
from jax.experimental.pallas import tpu as pltpu


def _round_up(a, b):
    return (a + b - 1) // b * b


def _pick_intermediate_tile(I, ti_target):
    """Largest multiple of 128 that divides I and is <= ti_target (else I)."""
    if I % 128 != 0:
        return I
    t = min(max(128, ti_target - ti_target % 128), I)
    while I % t != 0:
        t -= 128
    return t


def clip_mlp_kernel(x_ref, w1_ref, w2_ref, o_ref, acc_ref):
    """One (row-tile, intermediate-chunk) step of the CLIP MLP.

    x_ref:   (tm, H)  row tile of flattened hidden_states
    w1_ref:  (H, ti)  chunk of fc1.T   (fc1 is (I, H) in torch layout)
    w2_ref:  (ti, H)  chunk of fc2.T   (fc2 is (H, I) in torch layout)
    o_ref:   (tm, H)  output row tile (written on the last intermediate chunk)
    acc_ref: (tm, H)  f32 accumulator, resident across the intermediate axis
    """
    k = pl.program_id(1)

    @pl.when(k == 0)
    def _():
        acc_ref[...] = jnp.zeros_like(acc_ref)

    # fc1 chunk: the contraction over H is complete within a single chunk, so
    # applying QuickGELU per chunk is exact.
    h = jnp.dot(x_ref[...], w1_ref[...], preferred_element_type=jnp.float32)
    # QuickGELU in f32: h * sigmoid(1.702 * h)  (EUP/VPU, hidden under MXU).
    h = h * jax.nn.sigmoid(1.702 * h)

    # fc2 chunk: partial sum over this intermediate chunk, accumulated in f32.
    acc_ref[...] += jnp.dot(h.astype(w2_ref.dtype), w2_ref[...],
                            preferred_element_type=jnp.float32)

    @pl.when(k == pl.num_programs(1) - 1)
    def _():
        o_ref[...] = acc_ref[...].astype(o_ref.dtype)


@functools.partial(
    jax.jit,
    static_argnames=("tm", "ti", "compute_dtype", "max_resident_weight_bytes",
                     "vmem_limit_bytes"))
def clip_mlp(hidden_states, fc1, fc2, *, tm=256, ti=512,
             compute_dtype=jnp.bfloat16,
             max_resident_weight_bytes=32 * 1024 * 1024,
             vmem_limit_bytes=48 * 1024 * 1024):
    """CLIP MLP forward.

    hidden_states: (..., H); fc1: (I, H); fc2: (H, I) (native torch layouts).
    tm: target row tile (rounded to a multiple of 8; shrunk for tiny inputs).
    ti: target intermediate-dim chunk when weights are streamed.
    compute_dtype: dtype fed to the MXU (default bf16); accumulation and
                   QuickGELU always stay in f32. Pass jnp.float32 for full f32.
    max_resident_weight_bytes: if both (compute-dtype) weights fit within this
                   budget they stay fully VMEM-resident (single fetch,
                   Buffered(1)); otherwise they are streamed over I.
    """
    *lead, H = hidden_states.shape
    I, H1 = fc1.shape
    assert H1 == H and fc2.shape == (H, I), "weight shapes do not match input"
    M = math.prod(lead) if lead else 1
    out_dtype = hidden_states.dtype

    x2d = hidden_states.reshape(M, H)
    if compute_dtype is not None:
        x2d = x2d.astype(compute_dtype)
        fc1 = fc1.astype(compute_dtype)
        fc2 = fc2.astype(compute_dtype)

    # One-time wrapper transposes so both in-kernel matmuls contract the RHS
    # sublane dim (standard MXU layout) -- no per-grid-step weight relayout.
    w1 = fc1.T  # (H, I)
    w2 = fc2.T  # (I, H)

    # Row tiling: multiple of 8 sublanes; ragged last block is handled by
    # Pallas masked edge loads/stores (no wrapper pad / output slice copies).
    if M <= tm:
        tm_eff = M                      # single full-extent block (always legal)
    else:
        tm_eff = _round_up(tm, 8)
    n_m = pl.cdiv(M, tm_eff)

    # Intermediate (I) tiling: resident weights when they fit, else stream.
    w_itemsize = jnp.dtype(w1.dtype).itemsize
    if 2 * H * I * w_itemsize <= max_resident_weight_bytes:
        ti_eff = I
    else:
        ti_eff = _pick_intermediate_tile(I, ti)
    n_i = I // ti_eff

    # Resident (constant-index) weights are fetched once -> no double buffer.
    w_pipe = dict(pipeline_mode=pl.Buffered(1)) if n_i == 1 else {}

    out2d = pl.pallas_call(
        clip_mlp_kernel,
        out_shape=jax.ShapeDtypeStruct((M, H), out_dtype),
        grid_spec=pltpu.PrefetchScalarGridSpec(
            num_scalar_prefetch=0,
            grid=(n_m, n_i),
            in_specs=[
                pl.BlockSpec((tm_eff, H), lambda i, k: (i, 0)),        # x rows
                pl.BlockSpec((H, ti_eff), lambda i, k: (0, k), **w_pipe),  # fc1.T
                pl.BlockSpec((ti_eff, H), lambda i, k: (k, 0), **w_pipe),  # fc2.T
            ],
            out_specs=pl.BlockSpec((tm_eff, H), lambda i, k: (i, 0)),
            scratch_shapes=[pltpu.VMEM((tm_eff, H), jnp.float32)],
        ),
        compiler_params=pltpu.CompilerParams(
            dimension_semantics=("parallel", "arbitrary"),
            vmem_limit_bytes=vmem_limit_bytes,
        ),
    )(x2d, w1, w2)

    return out2d.reshape(*lead, H)


def reference_mlp(hidden_states, fc1, fc2):
    h = jnp.einsum("...h,ih->...i", hidden_states, fc1)
    h = h * jax.nn.sigmoid(1.702 * h)
    return jnp.einsum("...i,hi->...h", h, fc2)


if __name__ == "__main__":
    key = jax.random.PRNGKey(0)
    keys = jax.random.split(key, 6)

    def make_weights(k1, k2, H, I):
        # Deterministic xavier_normal_-style init (matches weight_init()).
        std1 = (2.0 / (H + I)) ** 0.5
        std2 = (2.0 / (I + H)) ** 0.5
        fc1 = jax.random.normal(k1, (I, H), jnp.float32) * std1
        fc2 = jax.random.normal(k2, (H, I), jnp.float32) * std2
        return fc1, fc2

    # Small CLIPVisionConfig-like sizes.
    hidden_size, intermediate_size = 32, 128
    fc1, fc2 = make_weights(keys[0], keys[1], hidden_size, intermediate_size)

    # Case 1: f32 compute, divisible token count, resident weights.
    x1 = jax.random.normal(keys[2], (2, 8, hidden_size), jnp.float32)
    out1 = jax.block_until_ready(clip_mlp(x1, fc1, fc2, compute_dtype=jnp.float32))
    ref1 = reference_mlp(x1, fc1, fc2)
    assert out1.shape == x1.shape
    assert jnp.allclose(out1, ref1, atol=1e-4, rtol=1e-4), "mismatch (f32 resident)"

    # Case 2: default bf16 MXU path + ragged (non multiple-of-8) token count.
    x2 = jax.random.normal(keys[3], (2, 57, hidden_size), jnp.float32)
    out2 = jax.block_until_ready(clip_mlp(x2, fc1, fc2))
    ref2 = reference_mlp(x2, fc1, fc2)
    assert out2.shape == x2.shape
    assert jnp.allclose(out2, ref2, atol=5e-2, rtol=5e-2), "mismatch (bf16 ragged)"

    # Case 3: forced I-streaming (multi-chunk accumulator path) + multi row tiles.
    H3, I3 = 128, 256
    fc1b, fc2b = make_weights(keys[4], keys[5], H3, I3)
    x3 = jax.random.normal(keys[2], (2, 16, H3), jnp.float32)
    out3 = jax.block_until_ready(
        clip_mlp(x3, fc1b, fc2b, compute_dtype=jnp.float32, tm=16, ti=128,
                 max_resident_weight_bytes=0))
    ref3 = reference_mlp(x3, fc1b, fc2b)
    assert out3.shape == x3.shape
    assert jnp.allclose(out3, ref3, atol=1e-4, rtol=1e-4), "mismatch (f32 streamed)"

    print("KERNEL_OK")
</pallas_src>

<mosaic_0001>
module attributes {stable_mosaic.version = 11 : i64} {
  func.func @clip_mlp_kernel(%arg0: i32, %arg1: i32, %arg2: memref<16x32xf32, #tpu.memory_space<vmem>>, %arg3: memref<32x128xf32, #tpu.memory_space<vmem>>, %arg4: memref<128x32xf32, #tpu.memory_space<vmem>>, %arg5: memref<16x32xf32, #tpu.memory_space<vmem>>, %arg6: memref<16x32xf32, #tpu.memory_space<vmem>>) attributes {dimension_semantics = [#tpu.dimension_semantics<parallel>, #tpu.dimension_semantics<arbitrary>], iteration_bounds = array<i64: 1, 1>, scalar_prefetch = 0 : i64, scratch_operands = 1 : i64, tpu.core_type = #tpu.core_type<tc>, window_params = [{transform_indices = @transform_0, window_bounds = array<i64: 16, 32>}, {pipeline_mode = #tpu.pipeline_mode<synchronous>, transform_indices = @transform_1, window_bounds = array<i64: 32, 128>}, {pipeline_mode = #tpu.pipeline_mode<synchronous>, transform_indices = @transform_2, window_bounds = array<i64: 128, 32>}, {transform_indices = @transform_3, window_bounds = array<i64: 16, 32>}]} {
    %c0_i32 = arith.constant 0 : i32
    %0 = arith.cmpi eq, %arg1, %c0_i32 : i32
    %1 = arith.extui %0 : i1 to i32
    %c0_i32_0 = arith.constant 0 : i32
    %2 = arith.cmpi ne, %1, %c0_i32_0 : i32
    scf.if %2 {
      %cst_15 = arith.constant 0.000000e+00 : f32
      %22 = vector.broadcast %cst_15 : f32 to vector<16x32xf32>
      %c0_16 = arith.constant 0 : index
      %c0_17 = arith.constant 0 : index
      %23 = vector.load %arg6[%c0_16, %c0_17] : memref<16x32xf32, #tpu.memory_space<vmem>>, vector<16x32xf32>
      tpu.vector_store %arg6[%c0_16, %c0_17], %22 {strides = array<i32>} : memref<16x32xf32, #tpu.memory_space<vmem>>, vector<16x32xf32>,
    } else {
    }
    %c0 = arith.constant 0 : index
    %c0_1 = arith.constant 0 : index
    %3 = vector.load %arg2[%c0, %c0_1] : memref<16x32xf32, #tpu.memory_space<vmem>>, vector<16x32xf32>
    %c0_2 = arith.constant 0 : index
    %c0_3 = arith.constant 0 : index
    %4 = vector.load %arg3[%c0_2, %c0_3] : memref<32x128xf32, #tpu.memory_space<vmem>>, vector<32x128xf32>
    %cst = arith.constant dense<0.000000e+00> : vector<16x128xf32>
    %5 = tpu.matmul %3, %4, %cst {dimension_numbers = #tpu.dot_dimension_numbers<[1], [0], [0], [1], [0, 0, 1, 1], [], []>} : vector<16x32xf32>, vector<32x128xf32>, vector<16x128xf32> -> vector<16x128xf32>
    %cst_4 = arith.constant 1.702000e+00 : f32
    %6 = vector.broadcast %cst_4 : f32 to vector<16x128xf32>
    %7 = arith.mulf %6, %5 : vector<16x128xf32>
    %8 = arith.negf %7 : vector<16x128xf32>
    %9 = math.exp %8 : vector<16x128xf32>
    %cst_5 = arith.constant 1.000000e+00 : f32
    %10 = vector.broadcast %cst_5 : f32 to vector<16x128xf32>
    %11 = arith.addf %10, %9 : vector<16x128xf32>
    %12 = arith.divf %10, %11 : vector<16x128xf32>
    %13 = arith.mulf %5, %12 : vector<16x128xf32>
    %c0_6 = arith.constant 0 : index
    %c0_7 = arith.constant 0 : index
    %14 = vector.load %arg6[%c0_6, %c0_7] : memref<16x32xf32, #tpu.memory_space<vmem>>, vector<16x32xf32>
    %c0_8 = arith.constant 0 : index
    %c0_9 = arith.constant 0 : index
    %15 = vector.load %arg4[%c0_8, %c0_9] : memref<128x32xf32, #tpu.memory_space<vmem>>, vector<128x32xf32>
    %cst_10 = arith.constant dense<0.000000e+00> : vector<16x32xf32>
    %16 = tpu.matmul %13, %15, %cst_10 {dimension_numbers = #tpu.dot_dimension_numbers<[1], [0], [0], [1], [0, 0, 1, 1], [], []>} : vector<16x128xf32>, vector<128x32xf32>, vector<16x32xf32> -> vector<16x32xf32>
    %17 = arith.addf %14, %16 : vector<16x32xf32>
    %c0_11 = arith.constant 0 : index
    %c0_12 = arith.constant 0 : index
    %18 = vector.load %arg6[%c0_11, %c0_12] : memref<16x32xf32, #tpu.memory_space<vmem>>, vector<16x32xf32>
    tpu.vector_store %arg6[%c0_11, %c0_12], %17 {strides = array<i32>} : memref<16x32xf32, #tpu.memory_space<vmem>>, vector<16x32xf32>,
    %c0_i32_13 = arith.constant 0 : i32
    %19 = arith.cmpi eq, %arg1, %c0_i32_13 : i32
    %20 = arith.extui %19 : i1 to i32
    %c0_i32_14 = arith.constant 0 : i32
    %21 = arith.cmpi ne, %20, %c0_i32_14 : i32
    scf.if %21 {
      %c0_15 = arith.constant 0 : index
      %c0_16 = arith.constant 0 : index
      %22 = vector.load %arg6[%c0_15, %c0_16] : memref<16x32xf32, #tpu.memory_space<vmem>>, vector<16x32xf32>
      %c0_17 = arith.constant 0 : index
      %c0_18 = arith.constant 0 : index
      %23 = vector.load %arg5[%c0_17, %c0_18] : memref<16x32xf32, #tpu.memory_space<vmem>>, vector<16x32xf32>
      tpu.vector_store %arg5[%c0_17, %c0_18], %22 {strides = array<i32>} : memref<16x32xf32, #tpu.memory_space<vmem>>, vector<16x32xf32>,
    } else {
    }
    return
  }
  func.func @transform_0(%arg0: i32, %arg1: i32) -> (i32, i32) {
    %c0_i32 = arith.constant 0 : i32
    %c0_i32_0 = arith.constant 0 : i32
    return %arg0, %c0_i32 : i32, i32
  }
  func.func @transform_1(%arg0: i32, %arg1: i32) -> (i32, i32) {
    %c0_i32 = arith.constant 0 : i32
    %c0_i32_0 = arith.constant 0 : i32
    return %c0_i32, %arg1 : i32, i32
  }
  func.func @transform_2(%arg0: i32, %arg1: i32) -> (i32, i32) {
    %c0_i32 = arith.constant 0 : i32
    %c0_i32_0 = arith.constant 0 : i32
    return %arg1, %c0_i32 : i32, i32
  }
  func.func @transform_3(%arg0: i32, %arg1: i32) -> (i32, i32) {
    %c0_i32 = arith.constant 0 : i32
    %c0_i32_0 = arith.constant 0 : i32
    return %arg0, %c0_i32 : i32, i32
  }
}

</mosaic_0001>

<bundles_post_ra>
// kernel: clip_mlp.1
= control target key start
LH: loop header
LB: loop body
LE: loop exit
PB: predicated region body
PF: predicated region fallthrough
CT: control target
= control target key end

     0   :  { %vm19_vm0 = vcmask 261120   ;;  %s506_s0 = inlined_call_operand.vmem [shape: f32[16,32], index: 0, kind: input, shape index: {}]   ;;  %s507_s1 = inlined_call_operand.vmem [shape: f32[32,128], index: 1, kind: input, shape index: {}]   ;;  %s508_s2 = inlined_call_operand.vmem [shape: f32[128,32], index: 2, kind: input, shape index: {}]   ;;  %s509_s3 = inlined_call_operand.hbm [shape: f32[16,32], index: 3, kind: output, shape index: {}]  }
   0x1   :  { %v24_v0 = vld [vmem:[%s507_s1] sm:$0xff]  ;;  %v25_v1 = vld [vmem:[%s507_s1 + $0x8] sm:$0xff]  ;;  %v26_v2 = vld [vmem:[%s507_s1 + $0x10] sm:$0xff] }
   0x2   :  { %v320_v3 = vpack.c.bf16 %v25_v1, %v24_v0  ;;  %v27_v4 = vld [vmem:[%s507_s1 + $0x18] sm:$0xff]  ;;  %v22_v5 = vld [vmem:[%s506_s0] sm:$0xff] }
   0x3   :  { %v324_v6 = vpack.c.bf16 %v27_v4, %v26_v2  ;;  %282 = vmatprep.mubr.msk.f32.mxu0 %vm19_vm0, %v22_v5 }
   0x4   :  { %8 = vsyncpa [#allocation4], 0  ;;  %321 = vmatprep.subr.bf16.mxu0 %v320_v3  ;;  %v23_v7 = vld [vmem:[%s506_s0 + $0x8] sm:$0xff]  ;;  %v128_v8 = vld [vmem:[%s508_s2] sm:$0xff]  ;;  %v396_v32 = vmov 0.0  }
   0x5   :  { %323 = vmatpush3.bf16.msra.mxu0 %v320_v3  ;;  %v129_v9 = vld [vmem:[%s508_s2 + $0x8] sm:$0xff]  ;;  %v130_v11 = vld [vmem:[%s508_s2 + $0x10] sm:$0xff]  ;;  %v131_v12 = vld [vmem:[%s508_s2 + $0x18] sm:$0xff]  ;;  %21 = vst.msk [vmem:[#allocation2 + $0x8] sm:$0xff] %vm19_vm0, %v396_v32 }
   0x6   :  { %325 = vmatprep.subr.bf16.mxu0 %v324_v6  ;;  %v328_v10 = vpack.c.bf16 %v129_v9, %v128_v8  ;;  %v332_v13 = vpack.c.bf16 %v131_v12, %v130_v11  ;;  %v132_v14 = vld [vmem:[%s508_s2 + $0x20] sm:$0xff]  ;;  %v133_v15 = vld [vmem:[%s508_s2 + $0x28] sm:$0xff]  ;;  %v134_v17 = vld [vmem:[%s508_s2 + $0x30] sm:$0xff]  ;;  %20 = vst.msk [vmem:[#allocation2] sm:$0xff] %vm19_vm0, %v396_v32 }
   0x7   :  { %v336_v16 = vpack.c.bf16 %v133_v15, %v132_v14  ;;  %v135_v18 = vld [vmem:[%s508_s2 + $0x38] sm:$0xff]  ;;  %v136_v20 = vld [vmem:[%s508_s2 + $0x40] sm:$0xff]  ;;  %v137_v21 = vld [vmem:[%s508_s2 + $0x48] sm:$0xff] }
   0x8   :  { %329 = vmatprep.subr.bf16.mxu1 %v328_v10  ;;  %v340_v19 = vpack.c.bf16 %v135_v18, %v134_v17  ;;  %v344_v22 = vpack.c.bf16 %v137_v21, %v136_v20  ;;  %v138_v23 = vld [vmem:[%s508_s2 + $0x50] sm:$0xff]  ;;  %v139_v24 = vld [vmem:[%s508_s2 + $0x58] sm:$0xff]  ;;  %v140_v26 = vld [vmem:[%s508_s2 + $0x60] sm:$0xff] }
   0x9   :  { %327 = vmatpush3.bf16.msra.mxu0 %v324_v6  ;;  %331 = vmatpush3.bf16.msra.mxu1 %v328_v10  ;;  %v348_v25 = vpack.c.bf16 %v139_v24, %v138_v23  ;;  %v141_v27 = vld [vmem:[%s508_s2 + $0x68] sm:$0xff]  ;;  %v142_v29 = vld [vmem:[%s508_s2 + $0x70] sm:$0xff]  ;;  %v143_v30 = vld [vmem:[%s508_s2 + $0x78] sm:$0xff]  ;;  %s397_s2 = smov [#allocation3]  }
   0xa   :  { %333 = vmatprep.subr.bf16.mxu1 %v332_v13  ;;  %v352_v28 = vpack.c.bf16 %v141_v27, %v140_v26  ;;  %v356_v31 = vpack.c.bf16 %v143_v30, %v142_v29  ;;  %s235_s26 = sshll.u32 %s397_s2, 4  ;;  %s236_s26 = int_to_ptr.vmem [resolvable:$true] %s235_s26 }
   0xb   :  { %s372_s27 = scalar_lea.vmem %s236_s26, 256  ;;  %p377_p1 = scmp.lt.s32.totalorder %s236_s26, %s236_s26 }
   0xc   :  { %283 = vmatmul.mubr.msk.f32.vlgmr.msra.gmra.mrb[0].mxu0 %vm19_vm0, %v23_v7  ;;  %v127_v47 = vld [vmem:[#allocation2 + $0x8] sm:$0xff]  ;;  %p373_p0 = scmp.ne.s32.totalorder %s236_s26, %s372_s27  ;;  %p378_p2 = scmp.lt.s32.totalorder %s372_s27, %s372_s27 }
   0xd   :  { %335 = vmatpush3.bf16.msra.mxu1 %v332_v13  ;;  %v126_v48 = vld [vmem:[#allocation2] sm:$0xff] }
   0xe   :  { %337 = vmatprep.subr.bf16.mxu1 %v336_v16  ;;  %p379_p3 = por %p378_p2, %p377_p1 }
  0x10   :  { %p380_p4 = pnand %p379_p3, %p373_p0 }
  0x11   :  { %339 = vmatpush3.bf16.msra.mxu1 %v336_v16 }
  0x12   :  { %341 = vmatprep.subr.bf16.mxu1 %v340_v19 }
  0x15   :  { %343 = vmatpush3.bf16.msra.mxu1 %v340_v19 }
  0x16   :  { %345 = vmatprep.subr.bf16.mxu1 %v344_v22 }
  0x19   :  { %347 = vmatpush3.bf16.msra.mxu1 %v344_v22 }
  0x1a   :  { %349 = vmatprep.subr.bf16.mxu1 %v348_v25 }
  0x1d   :  { %351 = vmatpush3.bf16.msra.mxu1 %v348_v25 }
  0x1e   :  { %353 = vmatprep.subr.bf16.mxu1 %v352_v28 }
  0x21   :  { %355 = vmatpush3.bf16.msra.mxu1 %v352_v28 }
  0x22   :  { %357 = vmatprep.subr.bf16.mxu1 %v356_v31 }
  0x25   :  { %359 = vmatpush3.bf16.msra.mxu1 %v356_v31 }
  0xdf   :  { %v284_v33 = vpop.f32.mrb[0].mxu0 }
  0xe0   :  { %v249_v34 = vmul.f32 -1.702, %v284_v33  ;;  %v101_v35 = vpop.f32.mrb[1].mxu0 }
  0xe1   :  { %v248_v36 = vmul.f32 -1.702, %v101_v35 }
  0xe2   :  { %v116_v37 = vmul.f32 1.442695, %v249_v34 }
  0xe3   :  { %v114_v38 = vmul.f32 1.442695, %v248_v36 }
  0xe4   :  { %364 = vpow2.f32 %v116_v37 }
  0xe5   :  { %366 = vpow2.f32 %v114_v38 }
  0xee   :  { %v365_v39 = vpop.eup %364 }
  0xef   :  { %v367_v40 = vpop.eup %366  ;;  %v119_v41 = vadd.f32 1.0, %v365_v39 }
  0xf0   :  { %v118_v42 = vadd.f32 1.0, %v367_v40 }
  0xf1   :  { %368 = vrcp.f32 %v119_v41 }
  0xf2   :  { %370 = vrcp.f32 %v118_v42 }
  0xfb   :  { %v369_v43 = vpop.eup %368 }
  0xfc   :  { %v371_v44 = vpop.eup %370  ;;  %v125_v46 = vmul.f32 %v369_v43, %v284_v33 }
  0xfd   :  { %v124_v45 = vmul.f32 %v371_v44, %v101_v35 }
  0xff   :  { %317 = vmatprep.mubr.f32.mxu1 %v124_v45 }
 0x100   :  { %318 = vmatmul.mubr.f32.vlgmr.msra.gmra.mrb[0].mxu1 %v125_v46 }
 0x1d3   :  { %v319_v49 = vpop.f32.mrb[0].mxu1 }
 0x1d4   :  { %v220_v50 = vadd.f32 %v319_v49, %v127_v47  ;;  %v210_v51 = vpop.f32.mrb[1].mxu1 }
 0x1d5   :  { %v219_v52 = vadd.f32 %v210_v51, %v126_v48 }
 0x1d6   :  { %222 = vst.msk [vmem:[#allocation2 + $0x8] sm:$0xff] %vm19_vm0, %v220_v50 }
 0x1d7   :  { %221 = vst.msk [vmem:[#allocation2] sm:$0xff] %vm19_vm0, %v219_v52 }
 0x1dd   :  { %v227_v53 = vld [vmem:[#allocation2 + $0x8] sm:$0xff] }
 0x1de   :  { %v226_v54 = vld [vmem:[#allocation2] sm:$0xff]  ;;  %229 = vst.msk [vmem:[#allocation3 + $0x8] sm:$0xff] %vm19_vm0, %v227_v53 }
 0x1df   :  { %228 = vst.msk [vmem:[#allocation3] sm:$0xff] %vm19_vm0, %v226_v54 }
 0x1e0   :  { %383 = shalt.err (!%p380_p4)
}
 0x1e1   :  { %s384_s30 = scalar_lea.hbm %s509_s3, 256 }
 0x1e2   :  { %p385_p5 = scmp.ne.s32.totalorder %s509_s3, %s384_s30  ;;  %p388_p6 = scmp.lt.u32.totalorder %s384_s30, %s509_s3 }
 0x1e4   :  { %p390_p7 = pnand %p388_p6, %p385_p5 }
 0x1e6   :  { %393 = shalt.err (!%p390_p7)
}
 0x1e7   :  { %s398_s7 = smov 128   ;;  %s399_s8 = smov 8  }
 0x1e8   :  { %241 = dma.vmem_to_hbm [thread:$0]  %s236_s26, 256, %s509_s3, [#allocation4], %s398_s7, %s398_s7, %s399_s8  }
 0x1e9   :  { %394 = dma.done.wait [#allocation4], 256  }
 0x1ea   :  { %395 = vsyncadd [#allocation4], 4294967040 }
 0x1eb   :  { %245 = vsyncpa [#allocation4], 1 }

</bundles_post_ra>
